<compile_context>
chip_gen: v5e
topology: v5e:2x2
jax: 0.10.0
libtpu: 0.0.40
codegen_flags: <defaults>
</compile_context>

<pallas_src>
import functools
import math

import jax
import jax.numpy as jnp
from jax.experimental import pallas as pl
from jax.experimental.pallas import tpu as pltpu

EMBEDDING_SIZE = 64
NUM_HEADS = 4
HEAD_SIZE = EMBEDDING_SIZE // NUM_HEADS  # 16


def _attention_head_kernel(x_ref, w_ref, o_ref):
    """One grid step: block_b batch rows of single-head self-attention.

    x_ref: (Bb*T, E)   activations (batch/time merged in the wrapper)
    w_ref: (E, 3H)     fused [Wq^T * 1/sqrt(H) | Wk^T | Wv^T]
    o_ref: (Bb, T, H)  attention output block
    """
    Bb, T, H = o_ref.shape

    # Single fused QKV projection on the MXU: (Bb*T, E) @ (E, 3H).
    qkv = jnp.dot(x_ref[...], w_ref[...],
                  preferred_element_type=jnp.float32)  # (Bb*T, 3H)

    # Lane slices at offsets 0/H/2H; softmax scale already folded into q cols.
    # TODO(synk): verify via pl.lower_as_mlir that these slices + 2D->3D
    # reshapes don't each materialize a relayout copy at larger shapes.
    q = qkv[:, 0 * H:1 * H].reshape(Bb, T, H)
    k = qkv[:, 1 * H:2 * H].reshape(Bb, T, H)
    v = qkv[:, 2 * H:3 * H].reshape(Bb, T, H)

    # scores[b, i, j] = <q_bi, k_bj>  (scale pre-applied via the weights)
    scores = jnp.einsum('bqh,bkh->bqk', q, k,
                        preferred_element_type=jnp.float32)  # (Bb, T, T)

    # Numerically stable, exact softmax (VALU has huge slack at these sizes;
    # exact divide keeps tight agreement with the PyTorch reference).
    m = jnp.max(scores, axis=-1, keepdims=True)
    p = jnp.exp(scores - m)
    attn = p / jnp.sum(p, axis=-1, keepdims=True)

    out = jnp.einsum('bqk,bkh->bqh', attn, v,
                     preferred_element_type=jnp.float32)  # (Bb, T, H)
    o_ref[...] = out.astype(o_ref.dtype)


@functools.partial(jax.jit, static_argnames=("block_b",))
def attention_head(data, w_key, w_query, w_value, *, block_b=None):
    """data: (B, T, E) f32; w_*: (H, E) f32 (PyTorch nn.Linear layout, no bias)."""
    B, T, E = data.shape
    H = w_key.shape[0]

    if block_b is None:
        # Whole batch per grid step at small sizes (amortizes ~0.35us/step
        # pipeline overhead).  For v7x batch-bound use, pass block_b <= B//2
        # (with block_b*T a multiple of 8) so both TensorCores get work; cap
        # block_b by a VMEM budget (v7x: 64 MiB/TC) if B grows large.
        block_b = B
    assert B % block_b == 0, (B, block_b)
    # Sublane legality of the (block_b*T, E) input block when tiling the batch.
    assert block_b == B or (block_b * T) % 8 == 0, (block_b, T)

    scale = 1.0 / math.sqrt(H)  # runtime head size, not the module constant
    # Fuse weights and fold the softmax scale into the query projection:
    #   x @ [scale*Wq^T | Wk^T | Wv^T] == [scale*(x@Wq^T), x@Wk^T, x@Wv^T]
    w_qkv = jnp.concatenate([w_query.T * scale, w_key.T, w_value.T],
                            axis=1)  # (E, 3H)

    # Free row-major metadata reshape in the (jitted) wrapper; avoids an
    # in-kernel reshape that could materialize a VMEM copy.
    x2d = data.reshape(B * T, E)

    return pl.pallas_call(
        _attention_head_kernel,
        out_shape=jax.ShapeDtypeStruct((B, T, H), data.dtype),
        grid_spec=pltpu.PrefetchScalarGridSpec(
            num_scalar_prefetch=0,
            grid=(B // block_b,),
            in_specs=[
                pl.BlockSpec((block_b * T, E), lambda b: (b, 0)),
                pl.BlockSpec((E, 3 * H), lambda b: (0, 0)),
            ],
            out_specs=pl.BlockSpec((block_b, T, H), lambda b: (b, 0, 0)),
        ),
        compiler_params=pltpu.CompilerParams(
            dimension_semantics=("parallel",),
        ),
    )(x2d, w_qkv)


def attention_head_ref(data, w_key, w_query, w_value):
    """Pure-JAX reference matching the PyTorch forward exactly."""
    H = w_key.shape[0]
    k = data @ w_key.T
    q = data @ w_query.T
    v = data @ w_value.T
    scores = (q @ jnp.swapaxes(k, -2, -1)) * (1.0 / math.sqrt(H))
    attn = jax.nn.softmax(scores, axis=-1)
    return attn @ v


if __name__ == "__main__":
    key = jax.random.PRNGKey(0)
    k_x, k_wk, k_wq, k_wv = jax.random.split(key, 4)

    B, T, E, H = 2, 8, EMBEDDING_SIZE, HEAD_SIZE

    x = jax.random.normal(k_x, (B, T, E), dtype=jnp.float32)

    # Deterministic init mimicking nn.Linear default: U(-1/sqrt(E), 1/sqrt(E)),
    # weight shape (out_features, in_features) = (H, E).
    bound = 1.0 / math.sqrt(E)
    w_key = jax.random.uniform(k_wk, (H, E), jnp.float32, -bound, bound)
    w_query = jax.random.uniform(k_wq, (H, E), jnp.float32, -bound, bound)
    w_value = jax.random.uniform(k_wv, (H, E), jnp.float32, -bound, bound)

    ref = attention_head_ref(x, w_key, w_query, w_value)

    # Whole-batch (single grid step) path.
    out = jax.block_until_ready(attention_head(x, w_key, w_query, w_value))
    assert out.shape == (B, T, H), out.shape
    assert jnp.allclose(out, ref, atol=1e-3, rtol=1e-3), (
        float(jnp.max(jnp.abs(out - ref)))
    )

    # Tiled-batch path (block_b < B): one batch row per grid step; this is the
    # >=2-grid-step config a v7x deployment would pick for megacore sharding.
    out_tiled = jax.block_until_ready(
        attention_head(x, w_key, w_query, w_value, block_b=1))
    assert out_tiled.shape == (B, T, H), out_tiled.shape
    assert jnp.allclose(out_tiled, ref, atol=1e-3, rtol=1e-3), (
        float(jnp.max(jnp.abs(out_tiled - ref)))
    )

    print("KERNEL_OK")
</pallas_src>

<mosaic_0001>
module attributes {stable_mosaic.version = 11 : i64} {
  func.func @_attention_head_kernel(%arg0: i32, %arg1: memref<16x64xf32, #tpu.memory_space<vmem>>, %arg2: memref<64x48xf32, #tpu.memory_space<vmem>>, %arg3: memref<2x8x16xf32, #tpu.memory_space<vmem>>) attributes {dimension_semantics = [#tpu.dimension_semantics<parallel>], iteration_bounds = array<i64: 1>, scalar_prefetch = 0 : i64, scratch_operands = 0 : i64, tpu.core_type = #tpu.core_type<tc>, window_params = [{transform_indices = @transform_0, window_bounds = array<i64: 16, 64>}, {pipeline_mode = #tpu.pipeline_mode<synchronous>, transform_indices = @transform_1, window_bounds = array<i64: 64, 48>}, {transform_indices = @transform_2, window_bounds = array<i64: 2, 8, 16>}]} {
    %c0 = arith.constant 0 : index
    %c0_0 = arith.constant 0 : index
    %0 = vector.load %arg1[%c0, %c0_0] : memref<16x64xf32, #tpu.memory_space<vmem>>, vector<16x64xf32>
    %c0_1 = arith.constant 0 : index
    %c0_2 = arith.constant 0 : index
    %1 = vector.load %arg2[%c0_1, %c0_2] : memref<64x48xf32, #tpu.memory_space<vmem>>, vector<64x48xf32>
    %cst = arith.constant dense<0.000000e+00> : vector<16x48xf32>
    %2 = tpu.matmul %0, %1, %cst {dimension_numbers = #tpu.dot_dimension_numbers<[1], [0], [0], [1], [0, 0, 1, 1], [], []>} : vector<16x64xf32>, vector<64x48xf32>, vector<16x48xf32> -> vector<16x48xf32>
    %3 = vector.extract_strided_slice %2 {offsets = [0, 0], sizes = [16, 16], strides = [1, 1]} : vector<16x48xf32> to vector<16x16xf32>
    %4 = vector.shape_cast %3 : vector<16x16xf32> to vector<2x8x16xf32>
    %5 = vector.extract_strided_slice %2 {offsets = [0, 16], sizes = [16, 16], strides = [1, 1]} : vector<16x48xf32> to vector<16x16xf32>
    %6 = vector.shape_cast %5 : vector<16x16xf32> to vector<2x8x16xf32>
    %7 = vector.extract_strided_slice %2 {offsets = [0, 32], sizes = [16, 16], strides = [1, 1]} : vector<16x48xf32> to vector<16x16xf32>
    %8 = vector.shape_cast %7 : vector<16x16xf32> to vector<2x8x16xf32>
    "tpu.trace_start"() <{level = 10 : i32, message = "bqh,bkh->bqk"}> : () -> ()
    %cst_3 = arith.constant dense<0.000000e+00> : vector<2x8x8xf32>
    %9 = tpu.matmul %4, %6, %cst_3 {dimension_numbers = #tpu.dot_dimension_numbers<[2], [2], [1], [1], [0, 0, 0, 1, 1, 1], [0], [0]>} : vector<2x8x16xf32>, vector<2x8x16xf32>, vector<2x8x8xf32> -> vector<2x8x8xf32>
    "tpu.trace_stop"() : () -> ()
    %cst_4 = arith.constant dense<0xFF800000> : vector<2x8xf32>
    %10 = vector.multi_reduction <maximumf>, %9, %cst_4 [2] : vector<2x8x8xf32> to vector<2x8xf32>
    %11 = vector.shape_cast %10 : vector<2x8xf32> to vector<2x8x1xf32>
    %12 = vector.broadcast %11 : vector<2x8x1xf32> to vector<2x8x8xf32>
    %13 = arith.subf %9, %12 : vector<2x8x8xf32>
    %14 = math.exp %13 : vector<2x8x8xf32>
    %cst_5 = arith.constant dense<0.000000e+00> : vector<2x8xf32>
    %15 = vector.multi_reduction <add>, %14, %cst_5 [2] : vector<2x8x8xf32> to vector<2x8xf32>
    %16 = vector.shape_cast %15 : vector<2x8xf32> to vector<2x8x1xf32>
    %17 = vector.broadcast %16 : vector<2x8x1xf32> to vector<2x8x8xf32>
    %18 = arith.divf %14, %17 : vector<2x8x8xf32>
    "tpu.trace_start"() <{level = 10 : i32, message = "bqk,bkh->bqh"}> : () -> ()
    %cst_6 = arith.constant dense<0.000000e+00> : vector<2x8x16xf32>
    %19 = tpu.matmul %18, %8, %cst_6 {dimension_numbers = #tpu.dot_dimension_numbers<[2], [1], [1], [2], [0, 0, 0, 1, 1, 2], [0], [0]>} : vector<2x8x8xf32>, vector<2x8x16xf32>, vector<2x8x16xf32> -> vector<2x8x16xf32>
    "tpu.trace_stop"() : () -> ()
    %c0_7 = arith.constant 0 : index
    %c0_8 = arith.constant 0 : index
    %c0_9 = arith.constant 0 : index
    %20 = vector.load %arg3[%c0_7, %c0_8, %c0_9] : memref<2x8x16xf32, #tpu.memory_space<vmem>>, vector<2x8x16xf32>
    tpu.vector_store %arg3[%c0_7, %c0_8, %c0_9], %19 {strides = array<i32>} : memref<2x8x16xf32, #tpu.memory_space<vmem>>, vector<2x8x16xf32>,
    return
  }
  func.func @transform_0(%arg0: i32) -> (i32, i32) {
    %c0_i32 = arith.constant 0 : i32
    %c0_i32_0 = arith.constant 0 : i32
    return %arg0, %c0_i32 : i32, i32
  }
  func.func @transform_1(%arg0: i32) -> (i32, i32) {
    %c0_i32 = arith.constant 0 : i32
    %c0_i32_0 = arith.constant 0 : i32
    %c0_i32_1 = arith.constant 0 : i32
    return %c0_i32, %c0_i32_0 : i32, i32
  }
  func.func @transform_2(%arg0: i32) -> (i32, i32, i32) {
    %c0_i32 = arith.constant 0 : i32
    %c0_i32_0 = arith.constant 0 : i32
    %c0_i32_1 = arith.constant 0 : i32
    return %arg0, %c0_i32, %c0_i32_0 : i32, i32, i32
  }
}

</mosaic_0001>

<bundles_post_ra>
// kernel: attention_head.1
= control target key start
LH: loop header
LB: loop body
LE: loop exit
PB: predicated region body
PF: predicated region fallthrough
CT: control target
= control target key end

     0   :  { %s340_s0 = inlined_call_operand.vmem [shape: f32[16,64], index: 0, kind: input, shape index: {}]   ;;  %s341_s1 = inlined_call_operand.vmem [shape: f32[64,48], index: 1, kind: input, shape index: {}]   ;;  %s342_s2 = inlined_call_operand.hbm [shape: f32[2,8,16], index: 2, kind: output, shape index: {}]  }
   0x1   :  { %v21_v0 = vld [vmem:[%s341_s1 + $0x38] sm:$0xff]  ;;  %v20_v1 = vld [vmem:[%s341_s1 + $0x30] sm:$0xff]  ;;  %v19_v2 = vld [vmem:[%s341_s1 + $0x28] sm:$0xff] }
   0x2   :  { %37 = vmatpush.msra.mxu0 %v21_v0 }
   0x4   :  { %38 = vmatpush.msra.mxu0 %v20_v1 }
   0x5   :  { %7 = vsyncpa [#allocation3], 0  ;;  %v18_v3 = vld [vmem:[%s341_s1 + $0x20] sm:$0xff]  ;;  %v17_v4 = vld [vmem:[%s341_s1 + $0x18] sm:$0xff]  ;;  %vm22_vm0 = vcmask 523264   ;;  %s275_s29 = smov 112  }
   0x6   :  { %39 = vmatpush.msra.mxu0 %v19_v2  ;;  %v16_v5 = vld [vmem:[%s341_s1 + $0x10] sm:$0xff]  ;;  %v15_v6 = vld [vmem:[%s341_s1 + $0x8] sm:$0xff]  ;;  %v14_v7 = vld [vmem:[%s341_s1] sm:$0xff]  ;;  %s276_s30 = smov 96   ;;  %vm55_vm1 = vcmask 130048   ;;  %vm107_vm2 = vcmask 64512  }
   0x7   :  { %v12_v8 = vld [vmem:[%s340_s0] sm:$0xff]  ;;  %v13_v9 = vld [vmem:[%s340_s0 + $0x8] sm:$0xff]  ;;  %s277_s0 = smov [#allocation2]   ;;  %s216_s5 = sshll.u32 %s342_s2, 4  ;;  %s217_s5 = int_to_ptr.hbm [resolvable:$true] %s216_s5 }
   0x8   :  { %40 = vmatpush.msra.mxu0 %v18_v3  ;;  %s214_s1 = sshll.u32 %s277_s0, 4  ;;  %s278_s6 = smov 128   ;;  %s215_s1 = int_to_ptr.vmem [resolvable:$true] %s214_s1 }
   0x9   :  { %s279_s7 = smov 8  }
   0xa   :  { %41 = vmatpush.msra.mxu0 %v17_v4 }
   0xc   :  { %42 = vmatpush.msra.mxu0 %v16_v5 }
   0xe   :  { %43 = vmatpush.msra.mxu0 %v15_v6 }
  0x10   :  { %44 = vmatpush.msra.mxu0 %v14_v7 }
  0x11   :  { %228 = vmatmul.msk.f32.vlgmr.msra.gmra.mxu0 %vm22_vm0, %v12_v8 }
  0x19   :  { %229 = vmatmul.msk.f32.gmra.mxu0 %vm22_vm0, %v13_v9 }
  0x8e   :  { %v46_v10 = vpop.f32.mrf.mxu0 }
  0x8f   :  { %53 = vrot.lane.b32.xlu0 %v46_v10, %s275_s29 }
  0x96   :  { %v49_v11 = vpop.f32.mrf.mxu0 }
  0x97   :  { %81 = vrot.lane.b32.xlu0 %v49_v11, %s275_s29 }
  0x9f   :  { %156 = vrot.lane.b32.xlu0 %v46_v10, %s276_s30 }
 0x101   :  { %v54_v12 = vpop.permute.xlu0 %53 }
 0x102   :  { %230 = vmatpush.xpose.msk.msra.mxu1 %vm55_vm1, %v54_v12 }
 0x105   :  { %231 = vmatmul.msk.f32.vlgmr.msra.gmra.mxu1 %vm55_vm1, %v46_v10 }
 0x109   :  { %v82_v13 = vpop.permute.xlu0 %81 }
 0x10a   :  { %232 = vmatpush.xpose.msk.msra.mxu2 %vm55_vm1, %v82_v13 }
 0x10d   :  { %233 = vmatmul.msk.f32.vlgmr.msra.gmra.mxu2 %vm55_vm1, %v49_v11 }
 0x111   :  { %v157_v14 = vpop.permute.xlu0 %156 }
 0x112   :  { %177 = vmatpush.msra.mxu3 %v157_v14 }
 0x182   :  { %v77_v15 = vpop.f32.mrf.mxu1 }
 0x183   :  { %v108_v16 = vsel %vm107_vm2, %v77_v15, -inf }
 0x184   :  { %109 = vmax.xlane.f32.xlu1 %v108_v16 }
 0x190   :  { %v104_v17 = vpop.f32.mrf.mxu2 }
 0x191   :  { %v111_v18 = vsel %vm107_vm2, %v104_v17, -inf }
 0x192   :  { %112 = vmax.xlane.f32.xlu1 %v111_v18 }
 0x1ab   :  { %182 = vrot.lane.b32.xlu1 %v49_v11, %s276_s30 }
 0x1f7   :  { %v110_v19 = vpop.xlane.xlu1 %109 }
 0x1f8   :  { %v114_v20 = vsub.f32 %v77_v15, %v110_v19 }
 0x1fa   :  { %v116_v21 = vmul.f32 1.442695, %v114_v20 }
 0x1fc   :  { %241 = vpow2.f32 %v116_v21 }
 0x202   :  { %v242_v22 = vpop.eup %241 }
 0x203   :  { %v120_v23 = vsel %vm107_vm2, %v242_v22, 0.0 }
 0x204   :  { %121 = vadd.xlane.f32.xlu2 %v120_v23 }
 0x205   :  { %v113_v24 = vpop.xlane.xlu1 %112 }
 0x206   :  { %v115_v25 = vsub.f32 %v104_v17, %v113_v24 }
 0x208   :  { %v118_v26 = vmul.f32 1.442695, %v115_v25 }
 0x20a   :  { %243 = vpow2.f32 %v118_v26 }
 0x210   :  { %v244_v27 = vpop.eup %243 }
 0x211   :  { %v123_v28 = vsel %vm107_vm2, %v244_v27, 0.0 }
 0x212   :  { %124 = vadd.xlane.f32.xlu2 %v123_v28 }
 0x21d   :  { %v183_v29 = vpop.permute.xlu1 %182 }
 0x21e   :  { %203 = vmatpush.msrb.mxu3 %v183_v29 }
 0x277   :  { %v122_v30 = vpop.xlane.xlu2 %121 }
 0x278   :  { %245 = vrcp.f32 %v122_v30  ;;  %v137_v34 = vand.u32 2147483648, %v122_v30  ;;  %v135_v36 = vand.u32 2147483647, %v122_v30  ;;  %vm131_vm4 = vweird.f32 %v122_v30 }
 0x27a   :  { %v138_v39 = vor.u32 1.1754944e-38, %v137_v34  ;;  %vm136_vm6 = vcmp.eq.f32.partialorder %v135_v36, 8.507059e+37 }
 0x27e   :  { %v246_v31 = vpop.eup %245 }
 0x27f   :  { %v127_v32 = vmul.f32 %v246_v31, %v122_v30  ;;  %vm132_vm3 = vweird.f32 %v246_v31 }
 0x280   :  { %vm133_vm5 = vmor %vm131_vm4, %vm132_vm3 }
 0x281   :  { %v128_v33 = vsub.f32 1.0, %v127_v32 }
 0x283   :  { %v129_v35 = vmul.f32 %v246_v31, %v128_v33 }
 0x285   :  { %v125_v37 = vpop.xlane.xlu2 %124  ;;  %v130_v38 = vadd.f32 %v246_v31, %v129_v35 }
 0x286   :  { %247 = vrcp.f32 %v125_v37  ;;  %v152_v46 = vand.u32 2147483648, %v125_v37  ;;  %v150_v48 = vand.u32 2147483647, %v125_v37  ;;  %vm146_vm8 = vweird.f32 %v125_v37 }
 0x287   :  { %v134_v40 = vsel %vm133_vm5, %v246_v31, %v130_v38 }
 0x288   :  { %v139_v41 = vsel %vm136_vm6, %v138_v39, %v134_v40  ;;  %v153_v50 = vor.u32 1.1754944e-38, %v152_v46  ;;  %vm151_vm10 = vcmp.eq.f32.partialorder %v150_v48, 8.507059e+37 }
 0x289   :  { %v140_v42 = vmul.f32 %v242_v22, %v139_v41 }
 0x28b   :  { %234 = vmatmul.msk.f32.vlgmr.msra.gmra.mxu3 %vm107_vm2, %v140_v42 }
 0x28c   :  { %v248_v43 = vpop.eup %247 }
 0x28d   :  { %v142_v44 = vmul.f32 %v248_v43, %v125_v37  ;;  %vm147_vm7 = vweird.f32 %v248_v43 }
 0x28e   :  { %vm148_vm9 = vmor %vm146_vm8, %vm147_vm7 }
 0x28f   :  { %v143_v45 = vsub.f32 1.0, %v142_v44 }
 0x291   :  { %v144_v47 = vmul.f32 %v248_v43, %v143_v45 }
 0x293   :  { %v145_v49 = vadd.f32 %v248_v43, %v144_v47 }
 0x295   :  { %v149_v51 = vsel %vm148_vm9, %v248_v43, %v145_v49 }
 0x296   :  { %v154_v52 = vsel %vm151_vm10, %v153_v50, %v149_v51 }
 0x297   :  { %v155_v53 = vmul.f32 %v244_v27, %v154_v52 }
 0x299   :  { %235 = vmatmul.msk.f32.vlgmr.msrb.gmra.mxu3 %vm107_vm2, %v155_v53 }
 0x30e   :  { %v179_v54 = vpop.f32.mrf.mxu3 }
 0x30f   :  { %208 = vst.msk [vmem:[#allocation2] sm:$0xff] %vm55_vm1, %v179_v54 }
 0x31c   :  { %v205_v55 = vpop.f32.mrf.mxu3 }
 0x31d   :  { %209 = vst.msk [vmem:[#allocation2 + $0x8] sm:$0xff] %vm55_vm1, %v205_v55 }
 0x31e   :  { %222 = dma.vmem_to_hbm [thread:$0]  %s215_s1, 256, %s217_s5, [#allocation3], %s278_s6, %s278_s6, %s279_s7  }
 0x31f   :  { %273 = dma.done.wait [#allocation3], 256  }
 0x320   :  { %274 = vsyncadd [#allocation3], 4294967040 }
 0x321   :  { %227 = vsyncpa [#allocation3], 1 }

</bundles_post_ra>
